<compile_context>
chip_gen: v6e
topology: v6e:2x2x1
jax: 0.10.0
libtpu: 0.0.40
codegen_flags: <defaults>
</compile_context>

<pallas_src>
import functools

import numpy as np
import jax
import jax.numpy as jnp
from jax.experimental import pallas as pl
from jax.experimental.pallas import tpu as pltpu

CONV_K = 4      # kernel size of both encoder convs
CONV_S = 2      # stride of both encoder convs
CONV_C1 = 16    # conv1 output channels
CONV_C2 = 32    # conv2 output channels
HEAD_PAD = 128  # lane-dense padded width of the merged alpha/beta head output


# ----------------------------------------------------------------- the kernel
def _fused_actor_kernel(p_ref, w1_ref, b1_ref, w2_ref, b2_ref,
                        wf1_ref, bf1_ref, wf2_ref, bf2_ref,
                        wf3_ref, bf3_ref, wh_ref, bh_ref, out_ref):
    """Whole forward in one body; everything is VMEM resident (default space).

    p_ref  : [n_taps * n_pos * B, C*K*K] tap-expanded conv1 patches
    w1_ref : [C*K*K, C1]        b1_ref : [1, C1]
    w2_ref : [n_taps, C1, C2]   b2_ref : [1, C2]      (tap-major conv2 weights)
    wf1_ref: [n_pos, C2, hid]   bf1_ref: [1, hid]     (fc1 regrouped per spatial pos)
    wf2/3  : [hid, hid]         bf2/3  : [1, hid]
    wh_ref : [hid, HEAD_PAD]    bh_ref : [1, HEAD_PAD] (alpha|beta|zero-pad columns)
    out_ref: [B, HEAD_PAD]      lane-dense merged head output
    """
    n_taps = w2_ref.shape[0]
    n_pos = wf1_ref.shape[0]
    batch = out_ref.shape[0]
    rows = n_pos * batch
    assert p_ref.shape[0] == n_taps * rows  # trace-time sanity check

    # conv1 for every (conv2-tap, conv2-position, batch) row at once: one matmul
    h1 = jnp.maximum(
        jnp.dot(p_ref[...], w1_ref[...], preferred_element_type=jnp.float32)
        + b1_ref[...], 0.0)                                   # [n_taps*rows, C1]

    # conv2: sum over taps of contiguous, sublane-aligned row blocks of h1
    acc2 = jnp.broadcast_to(b2_ref[...], (rows, b2_ref.shape[1]))
    for t in range(n_taps):
        acc2 = acc2 + jnp.dot(h1[t * rows:(t + 1) * rows, :], w2_ref[t],
                              preferred_element_type=jnp.float32)
    h2 = jnp.maximum(acc2, 0.0)                               # [rows, C2], rows=(pos, b)

    # fc1: contract channels per spatial position (equivalent to torch's
    # NCHW flatten because wf1 rows were permuted once at init)
    accf = jnp.broadcast_to(bf1_ref[...], (batch, bf1_ref.shape[1]))
    for pos in range(n_pos):
        accf = accf + jnp.dot(h2[pos * batch:(pos + 1) * batch, :], wf1_ref[pos],
                              preferred_element_type=jnp.float32)
    x = jnp.maximum(accf, 0.0)

    x = jnp.maximum(
        jnp.dot(x, wf2_ref[...], preferred_element_type=jnp.float32) + bf2_ref[...], 0.0)
    x = jnp.maximum(
        jnp.dot(x, wf3_ref[...], preferred_element_type=jnp.float32) + bf3_ref[...], 0.0)

    # merged alpha/beta heads, softplus(z) + 1, one lane-dense 128-wide store
    z = jnp.dot(x, wh_ref[...], preferred_element_type=jnp.float32) + bh_ref[...]
    out_ref[...] = jnp.maximum(z, 0.0) + jnp.log1p(jnp.exp(-jnp.abs(z))) + 1.0


# --------------------------------------------------------------- wrapper glue
def _full_spec(shape):
    """Whole (small) array as one VMEM-resident block, grid=()."""
    return pl.BlockSpec(shape, lambda: (0,) * len(shape))


def _build_tap_patches(state):
    """Tap-expanded im2col of the raw input (wrapper-side, ~8 KB of data).

    Row r = (((i2*K + j2)*oh2 + y2)*ow2 + x2)*B + b, column k = c*K*K + i1*K + j1:
      P[r, k] = state[b, c, S*S*y2 + S*i2 + i1, S*S*x2 + S*j2 + j1]
    i.e. the conv1 patch that produces the conv1 output needed by conv2 tap
    (i2, j2) at conv2 output position (y2, x2).  Keeping this gather in the
    wrapper keeps strided slicing / sublane->lane reshapes out of Mosaic.
    """
    B, C, H, W = state.shape
    K, S = CONV_K, CONV_S
    oh1 = (H - K) // S + 1
    ow1 = (W - K) // S + 1
    oh2 = (oh1 - K) // S + 1
    ow2 = (ow1 - K) // S + 1

    i2 = np.arange(K)[:, None, None]
    y2 = np.arange(oh2)[None, :, None]
    i1 = np.arange(K)[None, None, :]
    hidx = (S * S * y2 + S * i2 + i1).astype(np.int32)        # [K, oh2, K]
    j2 = np.arange(K)[:, None, None]
    x2 = np.arange(ow2)[None, :, None]
    j1 = np.arange(K)[None, None, :]
    widx = (S * S * x2 + S * j2 + j1).astype(np.int32)        # [K, ow2, K]

    g = jnp.take(state, jnp.asarray(hidx.reshape(-1)), axis=2)
    g = g.reshape(B, C, K, oh2, K, W)
    g = jnp.take(g, jnp.asarray(widx.reshape(-1)), axis=5)
    g = g.reshape(B, C, K, oh2, K, K, ow2, K)                 # [b,c,i2,y2,i1,j2,x2,j1]
    g = g.transpose(2, 5, 3, 6, 0, 1, 4, 7)                   # [i2,j2,y2,x2,b,c,i1,j1]
    return g.reshape(K * K * oh2 * ow2 * B, C * K * K)


@functools.partial(jax.jit, static_argnames=("output_dims",))
def scaled_actor_forward(state, params, output_dims=3):
    """state: [B, C, H, W] float32 (NCHW) -> (alpha, beta): [B, output_dims]."""
    B = state.shape[0]
    patches = _build_tap_patches(state)

    args = (patches,
            params["w1p"], params["b1p"], params["w2p"], params["b2p"],
            params["wf1p"], params["bf1p"], params["wf2p"], params["bf2p"],
            params["wf3p"], params["bf3p"], params["whp"], params["bhp"])

    out = pl.pallas_call(
        _fused_actor_kernel,
        out_shape=jax.ShapeDtypeStruct((B, HEAD_PAD), jnp.float32),
        in_specs=[_full_spec(a.shape) for a in args],
        out_specs=_full_spec((B, HEAD_PAD)),
        compiler_params=pltpu.CompilerParams(vmem_limit_bytes=32 * 1024 * 1024),
    )(*args)

    alpha = out[:, :output_dims]
    beta = out[:, output_dims:2 * output_dims]
    return alpha, beta


# ------------------------------------------------------------ parameter setup
def init_params(key, in_channels, H, W, hidden_size, output_dims):
    """Returns (raw torch-layout params, packed kernel params)."""
    keys = jax.random.split(key, 9)
    gain = float(np.sqrt(2.0))       # nn.init.calculate_gain('relu')

    def conv_xavier(k, oc, ic):
        fan_in, fan_out = ic * CONV_K * CONV_K, oc * CONV_K * CONV_K
        bound = gain * np.sqrt(6.0 / (fan_in + fan_out))
        return jax.random.uniform(k, (oc, ic, CONV_K, CONV_K), jnp.float32, -bound, bound)

    def conv_bias(k, oc, ic):
        bound = 1.0 / np.sqrt(ic * CONV_K * CONV_K)
        return jax.random.uniform(k, (oc,), jnp.float32, -bound, bound)

    def linear(k, fan_in, fan_out):
        kw_, kb_ = jax.random.split(k)
        bound = 1.0 / np.sqrt(fan_in)
        w = jax.random.uniform(kw_, (fan_out, fan_in), jnp.float32, -bound, bound)
        b = jax.random.uniform(kb_, (fan_out,), jnp.float32, -bound, bound)
        return w, b

    c1_w = conv_xavier(keys[0], CONV_C1, in_channels)
    c1_b = conv_bias(keys[1], CONV_C1, in_channels)
    c2_w = conv_xavier(keys[2], CONV_C2, CONV_C1)
    c2_b = conv_bias(keys[3], CONV_C2, CONV_C1)

    oh1 = (H - CONV_K) // CONV_S + 1
    ow1 = (W - CONV_K) // CONV_S + 1
    oh2 = (oh1 - CONV_K) // CONV_S + 1
    ow2 = (ow1 - CONV_K) // CONV_S + 1
    n_pos = oh2 * ow2
    fc_in = CONV_C2 * n_pos

    fc1_w, fc1_b = linear(keys[4], fc_in, hidden_size)
    fc2_w, fc2_b = linear(keys[5], hidden_size, hidden_size)
    fc3_w, fc3_b = linear(keys[6], hidden_size, hidden_size)
    a_w, a_b = linear(keys[7], hidden_size, output_dims)
    b_w, b_b = linear(keys[8], hidden_size, output_dims)

    raw = dict(c1_w=c1_w, c1_b=c1_b, c2_w=c2_w, c2_b=c2_b,
               fc1_w=fc1_w, fc1_b=fc1_b, fc2_w=fc2_w, fc2_b=fc2_b,
               fc3_w=fc3_w, fc3_b=fc3_b, a_w=a_w, a_b=a_b, b_w=b_w, b_b=b_b)

    # ---- one-time packing: all layout work moved off the hot path ----
    kk = CONV_K * CONV_K
    whp = jnp.zeros((hidden_size, HEAD_PAD), jnp.float32)
    whp = whp.at[:, :output_dims].set(a_w.T)
    whp = whp.at[:, output_dims:2 * output_dims].set(b_w.T)
    bhp = jnp.zeros((1, HEAD_PAD), jnp.float32)
    bhp = bhp.at[0, :output_dims].set(a_b)
    bhp = bhp.at[0, output_dims:2 * output_dims].set(b_b)

    packed = dict(
        w1p=c1_w.reshape(CONV_C1, -1).T,                                       # [C*K*K, C1]
        b1p=c1_b.reshape(1, CONV_C1),
        w2p=jnp.transpose(c2_w, (2, 3, 1, 0)).reshape(kk, CONV_C1, CONV_C2),   # [tap, C1, C2]
        b2p=c2_b.reshape(1, CONV_C2),
        # fc1 rows follow torch's NCHW flatten (oc, y2, x2) -> regroup per spatial pos
        wf1p=fc1_w.T.reshape(CONV_C2, n_pos, hidden_size).transpose(1, 0, 2),  # [pos, C2, hid]
        bf1p=fc1_b.reshape(1, hidden_size),
        wf2p=fc2_w.T, bf2p=fc2_b.reshape(1, hidden_size),
        wf3p=fc3_w.T, bf3p=fc3_b.reshape(1, hidden_size),
        whp=whp, bhp=bhp,
    )
    return raw, packed


# -------------------------------------------------------- pure-JAX reference
def reference_forward(state, raw):
    """XLA reference with identical semantics (verification only)."""
    x = jax.lax.conv_general_dilated(
        state, raw["c1_w"], window_strides=(CONV_S, CONV_S), padding="VALID",
        dimension_numbers=("NCHW", "OIHW", "NCHW"))
    x = jnp.maximum(x + raw["c1_b"][None, :, None, None], 0.0)
    x = jax.lax.conv_general_dilated(
        x, raw["c2_w"], window_strides=(CONV_S, CONV_S), padding="VALID",
        dimension_numbers=("NCHW", "OIHW", "NCHW"))
    x = jnp.maximum(x + raw["c2_b"][None, :, None, None], 0.0)
    x = x.reshape(x.shape[0], -1)                   # torch: state.view(B, -1)
    x = jnp.maximum(x @ raw["fc1_w"].T + raw["fc1_b"], 0.0)
    x = jnp.maximum(x @ raw["fc2_w"].T + raw["fc2_b"], 0.0)
    x = jnp.maximum(x @ raw["fc3_w"].T + raw["fc3_b"], 0.0)
    alpha = jax.nn.softplus(x @ raw["a_w"].T + raw["a_b"]) + 1.0
    beta = jax.nn.softplus(x @ raw["b_w"].T + raw["b_b"]) + 1.0
    return alpha, beta


# --------------------------------------------------------------------- main
if __name__ == "__main__":
    key = jax.random.PRNGKey(0)
    k_param, k_input = jax.random.split(key)

    B, C, H, W = 2, 4, 16, 16
    hidden_size = 32            # torch default is 256; kept small for the demo
    output_dims = 3             # action dims implied by sample()'s [2,1,1] scale

    raw, packed = init_params(k_param, C, H, W, hidden_size, output_dims)
    state = jax.random.normal(k_input, (B, C, H, W), jnp.float32)

    alpha, beta = scaled_actor_forward(state, packed, output_dims=output_dims)
    jax.block_until_ready((alpha, beta))

    # verify against the pure-JAX reference (loose tol: default TPU matmul precision)
    a_ref, b_ref = reference_forward(state, raw)
    np.testing.assert_allclose(np.asarray(alpha), np.asarray(a_ref), rtol=5e-2, atol=5e-2)
    np.testing.assert_allclose(np.asarray(beta), np.asarray(b_ref), rtol=5e-2, atol=5e-2)

    assert alpha.shape == (B, output_dims) and beta.shape == (B, output_dims)
    assert bool(jnp.all(alpha > 1.0)) and bool(jnp.all(beta > 1.0))
    print("KERNEL_OK")
</pallas_src>

<mosaic_0001>
module attributes {stable_mosaic.version = 11 : i64} {
  func.func @_fused_actor_kernel(%arg0: memref<128x64xf32, #tpu.memory_space<vmem>>, %arg1: memref<64x16xf32, #tpu.memory_space<vmem>>, %arg2: memref<1x16xf32, #tpu.memory_space<vmem>>, %arg3: memref<16x16x32xf32, #tpu.memory_space<vmem>>, %arg4: memref<1x32xf32, #tpu.memory_space<vmem>>, %arg5: memref<4x32x32xf32, #tpu.memory_space<vmem>>, %arg6: memref<1x32xf32, #tpu.memory_space<vmem>>, %arg7: memref<32x32xf32, #tpu.memory_space<vmem>>, %arg8: memref<1x32xf32, #tpu.memory_space<vmem>>, %arg9: memref<32x32xf32, #tpu.memory_space<vmem>>, %arg10: memref<1x32xf32, #tpu.memory_space<vmem>>, %arg11: memref<32x128xf32, #tpu.memory_space<vmem>>, %arg12: memref<1x128xf32, #tpu.memory_space<vmem>>, %arg13: memref<2x128xf32, #tpu.memory_space<vmem>>) attributes {dimension_semantics = [], scalar_prefetch = 0 : i64, scratch_operands = 0 : i64, tpu.core_type = #tpu.core_type<tc>} {
    %c0 = arith.constant 0 : index
    %c0_0 = arith.constant 0 : index
    %0 = vector.load %arg0[%c0, %c0_0] : memref<128x64xf32, #tpu.memory_space<vmem>>, vector<128x64xf32>
    %c0_1 = arith.constant 0 : index
    %c0_2 = arith.constant 0 : index
    %1 = vector.load %arg1[%c0_1, %c0_2] : memref<64x16xf32, #tpu.memory_space<vmem>>, vector<64x16xf32>
    %cst = arith.constant dense<0.000000e+00> : vector<128x16xf32>
    %2 = tpu.matmul %0, %1, %cst {dimension_numbers = #tpu.dot_dimension_numbers<[1], [0], [0], [1], [0, 0, 1, 1], [], []>} : vector<128x64xf32>, vector<64x16xf32>, vector<128x16xf32> -> vector<128x16xf32>
    %c0_3 = arith.constant 0 : index
    %c0_4 = arith.constant 0 : index
    %3 = vector.load %arg2[%c0_3, %c0_4] : memref<1x16xf32, #tpu.memory_space<vmem>>, vector<1x16xf32>
    %4 = vector.broadcast %3 : vector<1x16xf32> to vector<128x16xf32>
    %5 = arith.addf %2, %4 : vector<128x16xf32>
    %cst_5 = arith.constant 0.000000e+00 : f32
    %6 = vector.broadcast %cst_5 : f32 to vector<128x16xf32>
    %7 = arith.maximumf %5, %6 : vector<128x16xf32>
    %c0_6 = arith.constant 0 : index
    %c0_7 = arith.constant 0 : index
    %8 = vector.load %arg4[%c0_6, %c0_7] : memref<1x32xf32, #tpu.memory_space<vmem>>, vector<1x32xf32>
    %9 = vector.shape_cast %8 : vector<1x32xf32> to vector<1x32xf32>
    %10 = vector.broadcast %9 : vector<1x32xf32> to vector<8x32xf32>
    %11 = vector.extract_strided_slice %7 {offsets = [0, 0], sizes = [8, 16], strides = [1, 1]} : vector<128x16xf32> to vector<8x16xf32>
    %c0_8 = arith.constant 0 : index
    %c0_9 = arith.constant 0 : index
    %c0_10 = arith.constant 0 : index
    %12 = vector.load %arg3[%c0_8, %c0_9, %c0_10] : memref<16x16x32xf32, #tpu.memory_space<vmem>>, vector<1x16x32xf32>
    %13 = vector.shape_cast %12 : vector<1x16x32xf32> to vector<16x32xf32>
    %cst_11 = arith.constant dense<0.000000e+00> : vector<8x32xf32>
    %14 = tpu.matmul %11, %13, %cst_11 {dimension_numbers = #tpu.dot_dimension_numbers<[1], [0], [0], [1], [0, 0, 1, 1], [], []>} : vector<8x16xf32>, vector<16x32xf32>, vector<8x32xf32> -> vector<8x32xf32>
    %15 = arith.addf %10, %14 : vector<8x32xf32>
    %16 = vector.extract_strided_slice %7 {offsets = [8, 0], sizes = [8, 16], strides = [1, 1]} : vector<128x16xf32> to vector<8x16xf32>
    %c1 = arith.constant 1 : index
    %c0_12 = arith.constant 0 : index
    %c0_13 = arith.constant 0 : index
    %17 = vector.load %arg3[%c1, %c0_12, %c0_13] : memref<16x16x32xf32, #tpu.memory_space<vmem>>, vector<1x16x32xf32>
    %18 = vector.shape_cast %17 : vector<1x16x32xf32> to vector<16x32xf32>
    %cst_14 = arith.constant dense<0.000000e+00> : vector<8x32xf32>
    %19 = tpu.matmul %16, %18, %cst_14 {dimension_numbers = #tpu.dot_dimension_numbers<[1], [0], [0], [1], [0, 0, 1, 1], [], []>} : vector<8x16xf32>, vector<16x32xf32>, vector<8x32xf32> -> vector<8x32xf32>
    %20 = arith.addf %15, %19 : vector<8x32xf32>
    %21 = vector.extract_strided_slice %7 {offsets = [16, 0], sizes = [8, 16], strides = [1, 1]} : vector<128x16xf32> to vector<8x16xf32>
    %c2 = arith.constant 2 : index
    %c0_15 = arith.constant 0 : index
    %c0_16 = arith.constant 0 : index
    %22 = vector.load %arg3[%c2, %c0_15, %c0_16] : memref<16x16x32xf32, #tpu.memory_space<vmem>>, vector<1x16x32xf32>
    %23 = vector.shape_cast %22 : vector<1x16x32xf32> to vector<16x32xf32>
    %cst_17 = arith.constant dense<0.000000e+00> : vector<8x32xf32>
    %24 = tpu.matmul %21, %23, %cst_17 {dimension_numbers = #tpu.dot_dimension_numbers<[1], [0], [0], [1], [0, 0, 1, 1], [], []>} : vector<8x16xf32>, vector<16x32xf32>, vector<8x32xf32> -> vector<8x32xf32>
    %25 = arith.addf %20, %24 : vector<8x32xf32>
    %26 = vector.extract_strided_slice %7 {offsets = [24, 0], sizes = [8, 16], strides = [1, 1]} : vector<128x16xf32> to vector<8x16xf32>
    %c3 = arith.constant 3 : index
    %c0_18 = arith.constant 0 : index
    %c0_19 = arith.constant 0 : index
    %27 = vector.load %arg3[%c3, %c0_18, %c0_19] : memref<16x16x32xf32, #tpu.memory_space<vmem>>, vector<1x16x32xf32>
    %28 = vector.shape_cast %27 : vector<1x16x32xf32> to vector<16x32xf32>
    %cst_20 = arith.constant dense<0.000000e+00> : vector<8x32xf32>
    %29 = tpu.matmul %26, %28, %cst_20 {dimension_numbers = #tpu.dot_dimension_numbers<[1], [0], [0], [1], [0, 0, 1, 1], [], []>} : vector<8x16xf32>, vector<16x32xf32>, vector<8x32xf32> -> vector<8x32xf32>
    %30 = arith.addf %25, %29 : vector<8x32xf32>
    %31 = vector.extract_strided_slice %7 {offsets = [32, 0], sizes = [8, 16], strides = [1, 1]} : vector<128x16xf32> to vector<8x16xf32>
    %c4 = arith.constant 4 : index
    %c0_21 = arith.constant 0 : index
    %c0_22 = arith.constant 0 : index
    %32 = vector.load %arg3[%c4, %c0_21, %c0_22] : memref<16x16x32xf32, #tpu.memory_space<vmem>>, vector<1x16x32xf32>
    %33 = vector.shape_cast %32 : vector<1x16x32xf32> to vector<16x32xf32>
    %cst_23 = arith.constant dense<0.000000e+00> : vector<8x32xf32>
    %34 = tpu.matmul %31, %33, %cst_23 {dimension_numbers = #tpu.dot_dimension_numbers<[1], [0], [0], [1], [0, 0, 1, 1], [], []>} : vector<8x16xf32>, vector<16x32xf32>, vector<8x32xf32> -> vector<8x32xf32>
    %35 = arith.addf %30, %34 : vector<8x32xf32>
    %36 = vector.extract_strided_slice %7 {offsets = [40, 0], sizes = [8, 16], strides = [1, 1]} : vector<128x16xf32> to vector<8x16xf32>
    %c5 = arith.constant 5 : index
    %c0_24 = arith.constant 0 : index
    %c0_25 = arith.constant 0 : index
    %37 = vector.load %arg3[%c5, %c0_24, %c0_25] : memref<16x16x32xf32, #tpu.memory_space<vmem>>, vector<1x16x32xf32>
    %38 = vector.shape_cast %37 : vector<1x16x32xf32> to vector<16x32xf32>
    %cst_26 = arith.constant dense<0.000000e+00> : vector<8x32xf32>
    %39 = tpu.matmul %36, %38, %cst_26 {dimension_numbers = #tpu.dot_dimension_numbers<[1], [0], [0], [1], [0, 0, 1, 1], [], []>} : vector<8x16xf32>, vector<16x32xf32>, vector<8x32xf32> -> vector<8x32xf32>
    %40 = arith.addf %35, %39 : vector<8x32xf32>
    %41 = vector.extract_strided_slice %7 {offsets = [48, 0], sizes = [8, 16], strides = [1, 1]} : vector<128x16xf32> to vector<8x16xf32>
    %c6 = arith.constant 6 : index
    %c0_27 = arith.constant 0 : index
    %c0_28 = arith.constant 0 : index
    %42 = vector.load %arg3[%c6, %c0_27, %c0_28] : memref<16x16x32xf32, #tpu.memory_space<vmem>>, vector<1x16x32xf32>
    %43 = vector.shape_cast %42 : vector<1x16x32xf32> to vector<16x32xf32>
    %cst_29 = arith.constant dense<0.000000e+00> : vector<8x32xf32>
    %44 = tpu.matmul %41, %43, %cst_29 {dimension_numbers = #tpu.dot_dimension_numbers<[1], [0], [0], [1], [0, 0, 1, 1], [], []>} : vector<8x16xf32>, vector<16x32xf32>, vector<8x32xf32> -> vector<8x32xf32>
    %45 = arith.addf %40, %44 : vector<8x32xf32>
    %46 = vector.extract_strided_slice %7 {offsets = [56, 0], sizes = [8, 16], strides = [1, 1]} : vector<128x16xf32> to vector<8x16xf32>
    %c7 = arith.constant 7 : index
    %c0_30 = arith.constant 0 : index
    %c0_31 = arith.constant 0 : index
    %47 = vector.load %arg3[%c7, %c0_30, %c0_31] : memref<16x16x32xf32, #tpu.memory_space<vmem>>, vector<1x16x32xf32>
    %48 = vector.shape_cast %47 : vector<1x16x32xf32> to vector<16x32xf32>
    %cst_32 = arith.constant dense<0.000000e+00> : vector<8x32xf32>
    %49 = tpu.matmul %46, %48, %cst_32 {dimension_numbers = #tpu.dot_dimension_numbers<[1], [0], [0], [1], [0, 0, 1, 1], [], []>} : vector<8x16xf32>, vector<16x32xf32>, vector<8x32xf32> -> vector<8x32xf32>
    %50 = arith.addf %45, %49 : vector<8x32xf32>
    %51 = vector.extract_strided_slice %7 {offsets = [64, 0], sizes = [8, 16], strides = [1, 1]} : vector<128x16xf32> to vector<8x16xf32>
    %c8 = arith.constant 8 : index
    %c0_33 = arith.constant 0 : index
    %c0_34 = arith.constant 0 : index
    %52 = vector.load %arg3[%c8, %c0_33, %c0_34] : memref<16x16x32xf32, #tpu.memory_space<vmem>>, vector<1x16x32xf32>
    %53 = vector.shape_cast %52 : vector<1x16x32xf32> to vector<16x32xf32>
    %cst_35 = arith.constant dense<0.000000e+00> : vector<8x32xf32>
    %54 = tpu.matmul %51, %53, %cst_35 {dimension_numbers = #tpu.dot_dimension_numbers<[1], [0], [0], [1], [0, 0, 1, 1], [], []>} : vector<8x16xf32>, vector<16x32xf32>, vector<8x32xf32> -> vector<8x32xf32>
    %55 = arith.addf %50, %54 : vector<8x32xf32>
    %56 = vector.extract_strided_slice %7 {offsets = [72, 0], sizes = [8, 16], strides = [1, 1]} : vector<128x16xf32> to vector<8x16xf32>
    %c9 = arith.constant 9 : index
    %c0_36 = arith.constant 0 : index
    %c0_37 = arith.constant 0 : index
    %57 = vector.load %arg3[%c9, %c0_36, %c0_37] : memref<16x16x32xf32, #tpu.memory_space<vmem>>, vector<1x16x32xf32>
    %58 = vector.shape_cast %57 : vector<1x16x32xf32> to vector<16x32xf32>
    %cst_38 = arith.constant dense<0.000000e+00> : vector<8x32xf32>
    %59 = tpu.matmul %56, %58, %cst_38 {dimension_numbers = #tpu.dot_dimension_numbers<[1], [0], [0], [1], [0, 0, 1, 1], [], []>} : vector<8x16xf32>, vector<16x32xf32>, vector<8x32xf32> -> vector<8x32xf32>
    %60 = arith.addf %55, %59 : vector<8x32xf32>
    %61 = vector.extract_strided_slice %7 {offsets = [80, 0], sizes = [8, 16], strides = [1, 1]} : vector<128x16xf32> to vector<8x16xf32>
    %c10 = arith.constant 10 : index
    %c0_39 = arith.constant 0 : index
    %c0_40 = arith.constant 0 : index
    %62 = vector.load %arg3[%c10, %c0_39, %c0_40] : memref<16x16x32xf32, #tpu.memory_space<vmem>>, vector<1x16x32xf32>
    %63 = vector.shape_cast %62 : vector<1x16x32xf32> to vector<16x32xf32>
    %cst_41 = arith.constant dense<0.000000e+00> : vector<8x32xf32>
    %64 = tpu.matmul %61, %63, %cst_41 {dimension_numbers = #tpu.dot_dimension_numbers<[1], [0], [0], [1], [0, 0, 1, 1], [], []>} : vector<8x16xf32>, vector<16x32xf32>, vector<8x32xf32> -> vector<8x32xf32>
    %65 = arith.addf %60, %64 : vector<8x32xf32>
    %66 = vector.extract_strided_slice %7 {offsets = [88, 0], sizes = [8, 16], strides = [1, 1]} : vector<128x16xf32> to vector<8x16xf32>
    %c11 = arith.constant 11 : index
    %c0_42 = arith.constant 0 : index
    %c0_43 = arith.constant 0 : index
    %67 = vector.load %arg3[%c11, %c0_42, %c0_43] : memref<16x16x32xf32, #tpu.memory_space<vmem>>, vector<1x16x32xf32>
    %68 = vector.shape_cast %67 : vector<1x16x32xf32> to vector<16x32xf32>
    %cst_44 = arith.constant dense<0.000000e+00> : vector<8x32xf32>
    %69 = tpu.matmul %66, %68, %cst_44 {dimension_numbers = #tpu.dot_dimension_numbers<[1], [0], [0], [1], [0, 0, 1, 1], [], []>} : vector<8x16xf32>, vector<16x32xf32>, vector<8x32xf32> -> vector<8x32xf32>
    %70 = arith.addf %65, %69 : vector<8x32xf32>
    %71 = vector.extract_strided_slice %7 {offsets = [96, 0], sizes = [8, 16], strides = [1, 1]} : vector<128x16xf32> to vector<8x16xf32>
    %c12 = arith.constant 12 : index
    %c0_45 = arith.constant 0 : index
    %c0_46 = arith.constant 0 : index
    %72 = vector.load %arg3[%c12, %c0_45, %c0_46] : memref<16x16x32xf32, #tpu.memory_space<vmem>>, vector<1x16x32xf32>
    %73 = vector.shape_cast %72 : vector<1x16x32xf32> to vector<16x32xf32>
    %cst_47 = arith.constant dense<0.000000e+00> : vector<8x32xf32>
    %74 = tpu.matmul %71, %73, %cst_47 {dimension_numbers = #tpu.dot_dimension_numbers<[1], [0], [0], [1], [0, 0, 1, 1], [], []>} : vector<8x16xf32>, vector<16x32xf32>, vector<8x32xf32> -> vector<8x32xf32>
    %75 = arith.addf %70, %74 : vector<8x32xf32>
    %76 = vector.extract_strided_slice %7 {offsets = [104, 0], sizes = [8, 16], strides = [1, 1]} : vector<128x16xf32> to vector<8x16xf32>
    %c13 = arith.constant 13 : index
    %c0_48 = arith.constant 0 : index
    %c0_49 = arith.constant 0 : index
    %77 = vector.load %arg3[%c13, %c0_48, %c0_49] : memref<16x16x32xf32, #tpu.memory_space<vmem>>, vector<1x16x32xf32>
    %78 = vector.shape_cast %77 : vector<1x16x32xf32> to vector<16x32xf32>
    %cst_50 = arith.constant dense<0.000000e+00> : vector<8x32xf32>
    %79 = tpu.matmul %76, %78, %cst_50 {dimension_numbers = #tpu.dot_dimension_numbers<[1], [0], [0], [1], [0, 0, 1, 1], [], []>} : vector<8x16xf32>, vector<16x32xf32>, vector<8x32xf32> -> vector<8x32xf32>
    %80 = arith.addf %75, %79 : vector<8x32xf32>
    %81 = vector.extract_strided_slice %7 {offsets = [112, 0], sizes = [8, 16], strides = [1, 1]} : vector<128x16xf32> to vector<8x16xf32>
    %c14 = arith.constant 14 : index
    %c0_51 = arith.constant 0 : index
    %c0_52 = arith.constant 0 : index
    %82 = vector.load %arg3[%c14, %c0_51, %c0_52] : memref<16x16x32xf32, #tpu.memory_space<vmem>>, vector<1x16x32xf32>
    %83 = vector.shape_cast %82 : vector<1x16x32xf32> to vector<16x32xf32>
    %cst_53 = arith.constant dense<0.000000e+00> : vector<8x32xf32>
    %84 = tpu.matmul %81, %83, %cst_53 {dimension_numbers = #tpu.dot_dimension_numbers<[1], [0], [0], [1], [0, 0, 1, 1], [], []>} : vector<8x16xf32>, vector<16x32xf32>, vector<8x32xf32> -> vector<8x32xf32>
    %85 = arith.addf %80, %84 : vector<8x32xf32>
    %86 = vector.extract_strided_slice %7 {offsets = [120, 0], sizes = [8, 16], strides = [1, 1]} : vector<128x16xf32> to vector<8x16xf32>
    %c15 = arith.constant 15 : index
    %c0_54 = arith.constant 0 : index
    %c0_55 = arith.constant 0 : index
    %87 = vector.load %arg3[%c15, %c0_54, %c0_55] : memref<16x16x32xf32, #tpu.memory_space<vmem>>, vector<1x16x32xf32>
    %88 = vector.shape_cast %87 : vector<1x16x32xf32> to vector<16x32xf32>
    %cst_56 = arith.constant dense<0.000000e+00> : vector<8x32xf32>
    %89 = tpu.matmul %86, %88, %cst_56 {dimension_numbers = #tpu.dot_dimension_numbers<[1], [0], [0], [1], [0, 0, 1, 1], [], []>} : vector<8x16xf32>, vector<16x32xf32>, vector<8x32xf32> -> vector<8x32xf32>
    %90 = arith.addf %85, %89 : vector<8x32xf32>
    %cst_57 = arith.constant 0.000000e+00 : f32
    %91 = vector.broadcast %cst_57 : f32 to vector<8x32xf32>
    %92 = arith.maximumf %90, %91 : vector<8x32xf32>
    %c0_58 = arith.constant 0 : index
    %c0_59 = arith.constant 0 : index
    %93 = vector.load %arg6[%c0_58, %c0_59] : memref<1x32xf32, #tpu.memory_space<vmem>>, vector<1x32xf32>
    %94 = vector.shape_cast %93 : vector<1x32xf32> to vector<1x32xf32>
    %95 = vector.broadcast %94 : vector<1x32xf32> to vector<2x32xf32>
    %96 = vector.extract_strided_slice %92 {offsets = [0, 0], sizes = [2, 32], strides = [1, 1]} : vector<8x32xf32> to vector<2x32xf32>
    %c0_60 = arith.constant 0 : index
    %c0_61 = arith.constant 0 : index
    %c0_62 = arith.constant 0 : index
    %97 = vector.load %arg5[%c0_60, %c0_61, %c0_62] : memref<4x32x32xf32, #tpu.memory_space<vmem>>, vector<1x32x32xf32>
    %98 = vector.shape_cast %97 : vector<1x32x32xf32> to vector<32x32xf32>
    %cst_63 = arith.constant dense<0.000000e+00> : vector<2x32xf32>
    %99 = tpu.matmul %96, %98, %cst_63 {dimension_numbers = #tpu.dot_dimension_numbers<[1], [0], [0], [1], [0, 0, 1, 1], [], []>} : vector<2x32xf32>, vector<32x32xf32>, vector<2x32xf32> -> vector<2x32xf32>
    %100 = arith.addf %95, %99 : vector<2x32xf32>
    %101 = vector.extract_strided_slice %92 {offsets = [2, 0], sizes = [2, 32], strides = [1, 1]} : vector<8x32xf32> to vector<2x32xf32>
    %c1_64 = arith.constant 1 : index
    %c0_65 = arith.constant 0 : index
    %c0_66 = arith.constant 0 : index
    %102 = vector.load %arg5[%c1_64, %c0_65, %c0_66] : memref<4x32x32xf32, #tpu.memory_space<vmem>>, vector<1x32x32xf32>
    %103 = vector.shape_cast %102 : vector<1x32x32xf32> to vector<32x32xf32>
    %cst_67 = arith.constant dense<0.000000e+00> : vector<2x32xf32>
    %104 = tpu.matmul %101, %103, %cst_67 {dimension_numbers = #tpu.dot_dimension_numbers<[1], [0], [0], [1], [0, 0, 1, 1], [], []>} : vector<2x32xf32>, vector<32x32xf32>, vector<2x32xf32> -> vector<2x32xf32>
    %105 = arith.addf %100, %104 : vector<2x32xf32>
    %106 = vector.extract_strided_slice %92 {offsets = [4, 0], sizes = [2, 32], strides = [1, 1]} : vector<8x32xf32> to vector<2x32xf32>
    %c2_68 = arith.constant 2 : index
    %c0_69 = arith.constant 0 : index
    %c0_70 = arith.constant 0 : index
    %107 = vector.load %arg5[%c2_68, %c0_69, %c0_70] : memref<4x32x32xf32, #tpu.memory_space<vmem>>, vector<1x32x32xf32>
    %108 = vector.shape_cast %107 : vector<1x32x32xf32> to vector<32x32xf32>
    %cst_71 = arith.constant dense<0.000000e+00> : vector<2x32xf32>
    %109 = tpu.matmul %106, %108, %cst_71 {dimension_numbers = #tpu.dot_dimension_numbers<[1], [0], [0], [1], [0, 0, 1, 1], [], []>} : vector<2x32xf32>, vector<32x32xf32>, vector<2x32xf32> -> vector<2x32xf32>
    %110 = arith.addf %105, %109 : vector<2x32xf32>
    %111 = vector.extract_strided_slice %92 {offsets = [6, 0], sizes = [2, 32], strides = [1, 1]} : vector<8x32xf32> to vector<2x32xf32>
    %c3_72 = arith.constant 3 : index
    %c0_73 = arith.constant 0 : index
    %c0_74 = arith.constant 0 : index
    %112 = vector.load %arg5[%c3_72, %c0_73, %c0_74] : memref<4x32x32xf32, #tpu.memory_space<vmem>>, vector<1x32x32xf32>
    %113 = vector.shape_cast %112 : vector<1x32x32xf32> to vector<32x32xf32>
    %cst_75 = arith.constant dense<0.000000e+00> : vector<2x32xf32>
    %114 = tpu.matmul %111, %113, %cst_75 {dimension_numbers = #tpu.dot_dimension_numbers<[1], [0], [0], [1], [0, 0, 1, 1], [], []>} : vector<2x32xf32>, vector<32x32xf32>, vector<2x32xf32> -> vector<2x32xf32>
    %115 = arith.addf %110, %114 : vector<2x32xf32>
    %cst_76 = arith.constant 0.000000e+00 : f32
    %116 = vector.broadcast %cst_76 : f32 to vector<2x32xf32>
    %117 = arith.maximumf %115, %116 : vector<2x32xf32>
    %c0_77 = arith.constant 0 : index
    %c0_78 = arith.constant 0 : index
    %118 = vector.load %arg7[%c0_77, %c0_78] : memref<32x32xf32, #tpu.memory_space<vmem>>, vector<32x32xf32>
    %cst_79 = arith.constant dense<0.000000e+00> : vector<2x32xf32>
    %119 = tpu.matmul %117, %118, %cst_79 {dimension_numbers = #tpu.dot_dimension_numbers<[1], [0], [0], [1], [0, 0, 1, 1], [], []>} : vector<2x32xf32>, vector<32x32xf32>, vector<2x32xf32> -> vector<2x32xf32>
    %c0_80 = arith.constant 0 : index
    %c0_81 = arith.constant 0 : index
    %120 = vector.load %arg8[%c0_80, %c0_81] : memref<1x32xf32, #tpu.memory_space<vmem>>, vector<1x32xf32>
    %121 = vector.broadcast %120 : vector<1x32xf32> to vector<2x32xf32>
    %122 = arith.addf %119, %121 : vector<2x32xf32>
    %cst_82 = arith.constant 0.000000e+00 : f32
    %123 = vector.broadcast %cst_82 : f32 to vector<2x32xf32>
    %124 = arith.maximumf %122, %123 : vector<2x32xf32>
    %c0_83 = arith.constant 0 : index
    %c0_84 = arith.constant 0 : index
    %125 = vector.load %arg9[%c0_83, %c0_84] : memref<32x32xf32, #tpu.memory_space<vmem>>, vector<32x32xf32>
    %cst_85 = arith.constant dense<0.000000e+00> : vector<2x32xf32>
    %126 = tpu.matmul %124, %125, %cst_85 {dimension_numbers = #tpu.dot_dimension_numbers<[1], [0], [0], [1], [0, 0, 1, 1], [], []>} : vector<2x32xf32>, vector<32x32xf32>, vector<2x32xf32> -> vector<2x32xf32>
    %c0_86 = arith.constant 0 : index
    %c0_87 = arith.constant 0 : index
    %127 = vector.load %arg10[%c0_86, %c0_87] : memref<1x32xf32, #tpu.memory_space<vmem>>, vector<1x32xf32>
    %128 = vector.broadcast %127 : vector<1x32xf32> to vector<2x32xf32>
    %129 = arith.addf %126, %128 : vector<2x32xf32>
    %cst_88 = arith.constant 0.000000e+00 : f32
    %130 = vector.broadcast %cst_88 : f32 to vector<2x32xf32>
    %131 = arith.maximumf %129, %130 : vector<2x32xf32>
    %c0_89 = arith.constant 0 : index
    %c0_90 = arith.constant 0 : index
    %132 = vector.load %arg11[%c0_89, %c0_90] : memref<32x128xf32, #tpu.memory_space<vmem>>, vector<32x128xf32>
    %cst_91 = arith.constant dense<0.000000e+00> : vector<2x128xf32>
    %133 = tpu.matmul %131, %132, %cst_91 {dimension_numbers = #tpu.dot_dimension_numbers<[1], [0], [0], [1], [0, 0, 1, 1], [], []>} : vector<2x32xf32>, vector<32x128xf32>, vector<2x128xf32> -> vector<2x128xf32>
    %c0_92 = arith.constant 0 : index
    %c0_93 = arith.constant 0 : index
    %134 = vector.load %arg12[%c0_92, %c0_93] : memref<1x128xf32, #tpu.memory_space<vmem>>, vector<1x128xf32>
    %135 = vector.broadcast %134 : vector<1x128xf32> to vector<2x128xf32>
    %136 = arith.addf %133, %135 : vector<2x128xf32>
    %cst_94 = arith.constant 0.000000e+00 : f32
    %137 = vector.broadcast %cst_94 : f32 to vector<2x128xf32>
    %138 = arith.maximumf %136, %137 : vector<2x128xf32>
    %139 = math.absf %136 : vector<2x128xf32>
    %cst_95 = arith.constant 0.000000e+00 : f32
    %140 = vector.broadcast %cst_95 : f32 to vector<2x128xf32>
    %141 = arith.subf %140, %139 : vector<2x128xf32>
    %142 = math.exp %141 : vector<2x128xf32>
    %143 = math.log1p %142 : vector<2x128xf32>
    %144 = arith.addf %138, %143 : vector<2x128xf32>
    %cst_96 = arith.constant 1.000000e+00 : f32
    %145 = vector.broadcast %cst_96 : f32 to vector<2x128xf32>
    %146 = arith.addf %144, %145 : vector<2x128xf32>
    %c0_97 = arith.constant 0 : index
    %c0_98 = arith.constant 0 : index
    %147 = vector.load %arg13[%c0_97, %c0_98] : memref<2x128xf32, #tpu.memory_space<vmem>>, vector<2x128xf32>
    tpu.vector_store %arg13[%c0_97, %c0_98], %146 {strides = array<i32>} : memref<2x128xf32, #tpu.memory_space<vmem>>, vector<2x128xf32>,
    return
  }
}

</mosaic_0001>

<bundles_post_ra>
// kernel: scaled_actor_forward.1
= control target key start
LH: loop header
LB: loop body
LE: loop exit
PB: predicated region body
PF: predicated region fallthrough
CT: control target
= control target key end

     0   :  { %vm75_vm0 = vcmask 523264   ;;  %v2553_v24 = vmov 0.0   ;;  %vm2554_vm1 = vmmov 0   ;;  %vm294_vm2 = vcmask 130048   ;;  %s3067_s1 = inlined_call_operand.vmem [shape: f32[64,16], index: 1, kind: input, shape index: {}]   ;;  %s3068_s0 = inlined_call_operand.vmem [shape: f32[128,64], index: 0, kind: input, shape index: {}]   ;;  %s3069_s3 = inlined_call_operand.vmem [shape: f32[16,16,32], index: 3, kind: input, shape index: {}]   ;;  %s3070_s2 = inlined_call_operand.vmem [shape: f32[1,16], index: 2, kind: input, shape index: {}]   ;;  %s3071_s5 = inlined_call_operand.vmem [shape: f32[4,32,32], index: 5, kind: input, shape index: {}]   ;;  %s3072_s4 = inlined_call_operand.vmem [shape: f32[1,32], index: 4, kind: input, shape index: {}]   ;;  %s3073_s7 = inlined_call_operand.vmem [shape: f32[32,32], index: 7, kind: input, shape index: {}]   ;;  %s3074_s9 = inlined_call_operand.vmem [shape: f32[32,32], index: 9, kind: input, shape index: {}]   ;;  %s3075_s6 = inlined_call_operand.vmem [shape: f32[1,32], index: 6, kind: input, shape index: {}]   ;;  %s3076_s11 = inlined_call_operand.vmem [shape: f32[32,128], index: 11, kind: input, shape index: {}]   ;;  %s3077_s8 = inlined_call_operand.vmem [shape: f32[1,32], index: 8, kind: input, shape index: {}]   ;;  %s3078_s10 = inlined_call_operand.vmem [shape: f32[1,32], index: 10, kind: input, shape index: {}]   ;;  %s3079_s12 = inlined_call_operand.vmem [shape: f32[1,128], index: 12, kind: input, shape index: {}]   ;;  %s3080_s13 = inlined_call_operand.vmem [shape: f32[2,128], index: 13, kind: output, shape index: {}]  }
   0x1   :  { %v67_v0 = vld [vmem:[%s3067_s1 + $0x38] sm:$0xff]  ;;  %v66_v1 = vld [vmem:[%s3067_s1 + $0x30] sm:$0xff]  ;;  %v65_v2 = vld [vmem:[%s3067_s1 + $0x28] sm:$0xff]  ;;  %2358 = vmatprep.subr.mxu1 %v2553_v24  ;;  %2362 = vmatprep.mubr.msk.f32.mxu1 %vm2554_vm1, %v2553_v24  ;;  %vm1536_vm3 = vcmask 261120  }
   0x2   :  { %2318 = vmatprep.subr.mxu0 %v67_v0  ;;  %v44_v3 = vld [vmem:[%s3068_s0] sm:$0xff]  ;;  %v63_v5 = vld [vmem:[%s3067_s1 + $0x18] sm:$0xff]  ;;  %v62_v6 = vld [vmem:[%s3067_s1 + $0x10] sm:$0xff] }
   0x3   :  { %2319 = vmatpush3.msra.mxu0 %v67_v0  ;;  %2334 = vmatprep.mubr.msk.f32.mxu0 %vm75_vm0, %v44_v3  ;;  %v64_v4 = vld [vmem:[%s3067_s1 + $0x20] sm:$0xff]  ;;  %v61_v7 = vld [vmem:[%s3067_s1 + $0x8] sm:$0xff]  ;;  %v46_v10 = vld [vmem:[%s3068_s0 + $0x10] sm:$0xff] }
   0x4   :  { %2320 = vmatprep.subr.mxu0 %v66_v1  ;;  %v60_v8 = vld [vmem:[%s3067_s1] sm:$0xff]  ;;  %v45_v9 = vld [vmem:[%s3068_s0 + $0x8] sm:$0xff]  ;;  %v47_v11 = vld [vmem:[%s3068_s0 + $0x18] sm:$0xff] }
   0x5   :  { %2321 = vmatpush3.msra.mxu0 %v66_v1  ;;  %v48_v12 = vld [vmem:[%s3068_s0 + $0x20] sm:$0xff]  ;;  %v49_v13 = vld [vmem:[%s3068_s0 + $0x28] sm:$0xff]  ;;  %v50_v14 = vld [vmem:[%s3068_s0 + $0x30] sm:$0xff] }
   0x6   :  { %2322 = vmatprep.subr.mxu0 %v65_v2  ;;  %v51_v15 = vld [vmem:[%s3068_s0 + $0x38] sm:$0xff]  ;;  %v52_v16 = vld [vmem:[%s3068_s0 + $0x40] sm:$0xff]  ;;  %v53_v17 = vld [vmem:[%s3068_s0 + $0x48] sm:$0xff] }
   0x7   :  { %2323 = vmatpush3.msra.mxu0 %v65_v2  ;;  %v54_v18 = vld [vmem:[%s3068_s0 + $0x50] sm:$0xff]  ;;  %v55_v19 = vld [vmem:[%s3068_s0 + $0x58] sm:$0xff]  ;;  %v56_v20 = vld [vmem:[%s3068_s0 + $0x60] sm:$0xff] }
   0x8   :  { %2324 = vmatprep.subr.mxu0 %v64_v4  ;;  %v57_v21 = vld [vmem:[%s3068_s0 + $0x68] sm:$0xff]  ;;  %v58_v22 = vld [vmem:[%s3068_s0 + $0x70] sm:$0xff]  ;;  %v59_v23 = vld [vmem:[%s3068_s0 + $0x78] sm:$0xff] }
   0x9   :  { %2325 = vmatpush3.msra.mxu0 %v64_v4  ;;  %v293_v25 = vld [vmem:[%s3069_s3 + $0x8] sm:$0xff]  ;;  %v292_v26 = vld [vmem:[%s3069_s3] sm:$0xff]  ;;  %v2174_v27 = vld [vmem:[%s3069_s3 + $0xb8] sm:$0xff] }
   0xa   :  { %2326 = vmatprep.subr.mxu0 %v63_v5  ;;  %2359 = vmatpush3.msra.mxu1 %v293_v25  ;;  %v2173_v28 = vld [vmem:[%s3069_s3 + $0xb0] sm:$0xff]  ;;  %v2738_v30 = vld [vmem:[%s3070_s2] ss:$0 sm:$0xff]  ;;  %v2144_v36 = vld [vmem:[%s3069_s3 + $0x18] sm:$0xff] }
   0xb   :  { %2327 = vmatpush3.msra.mxu0 %v63_v5  ;;  %2360 = vmatprep.subr.mxu1 %v2553_v24  ;;  %v2143_v38 = vld [vmem:[%s3069_s3 + $0x10] sm:$0xff]  ;;  %v2147_v42 = vld [vmem:[%s3069_s3 + $0x28] sm:$0xff]  ;;  %v2146_v44 = vld [vmem:[%s3069_s3 + $0x20] sm:$0xff] }
   0xc   :  { %2328 = vmatprep.subr.mxu0 %v62_v6  ;;  %2361 = vmatpush3.msra.mxu1 %v292_v26  ;;  %v2150_v48 = vld [vmem:[%s3069_s3 + $0x38] sm:$0xff]  ;;  %v2149_v50 = vld [vmem:[%s3069_s3 + $0x30] sm:$0xff]  ;;  %v2153_v54 = vld [vmem:[%s3069_s3 + $0x48] sm:$0xff] }
   0xd   :  { %2329 = vmatpush3.msra.mxu0 %v62_v6  ;;  %2365 = vmatprep.subr.mxu1 %v2553_v24  ;;  %v2152_v56 = vld [vmem:[%s3069_s3 + $0x40] sm:$0xff]  ;;  %v2156_v60 = vld [vmem:[%s3069_s3 + $0x58] sm:$0xff]  ;;  %v2155_v63 = vld [vmem:[%s3069_s3 + $0x50] sm:$0xff] }
   0xe   :  { %2330 = vmatprep.subr.mxu0 %v61_v7  ;;  %v2180_v1 = vld [vmem:[%s3069_s3 + $0xd8] sm:$0xff]  ;;  %v2159_v5 = vld [vmem:[%s3069_s3 + $0x68] sm:$0xff]  ;;  %v2167_v26 = vld [vmem:[%s3069_s3 + $0x90] sm:$0xff] }
   0xf   :  { %2331 = vmatpush3.msra.mxu0 %v61_v7  ;;  %v2158_v7 = vld [vmem:[%s3069_s3 + $0x60] sm:$0xff] }
  0x10   :  { %2332 = vmatprep.subr.mxu0 %v60_v8 }
  0x11   :  { %2333 = vmatpush3.msra.mxu0 %v60_v8  ;;  %v2179_v8 = vld [vmem:[%s3069_s3 + $0xd0] sm:$0xff] }
  0x12   :  { %2335 = vmatmul.mubr.msk.f32.vlgmr.msra.gmra.mxu0 %vm75_vm0, %v45_v9  ;;  %2435 = vmatprep.subr.mxu0 %v2553_v24 }
  0x13   :  { %2337 = vmatprep.mubr.msk.f32.mxu0 %vm75_vm0, %v46_v10  ;;  %2436 = vmatpush3.msra.mxu0 %v2174_v27  ;;  %v2185_v27 = vld [vmem:[%s3069_s3 + $0xf0] sm:$0xff] }
  0x14   :  { %2437 = vmatprep.subr.mxu0 %v2553_v24 }
  0x15   :  { %2438 = vmatpush3.msra.mxu0 %v2173_v28 }
  0x16   :  { %2338 = vmatmul.mubr.msk.f32.gmra.mxu0 %vm75_vm0, %v47_v11  ;;  %2449 = vmatprep.subr.mxu0 %v2553_v24  ;;  %v2162_v11 = vld [vmem:[%s3069_s3 + $0x78] sm:$0xff] }
  0x17   :  { %2340 = vmatprep.mubr.msk.f32.mxu0 %vm75_vm0, %v48_v12 }
  0x1a   :  { %2341 = vmatmul.mubr.msk.f32.gmra.mxu0 %vm75_vm0, %v49_v13  ;;  %v2161_v13 = vld [vmem:[%s3069_s3 + $0x70] sm:$0xff] }
  0x1b   :  { %2343 = vmatprep.mubr.msk.f32.mxu0 %vm75_vm0, %v50_v14 }
  0x1e   :  { %2344 = vmatmul.mubr.msk.f32.gmra.mxu0 %vm75_vm0, %v51_v15 }
  0x1f   :  { %2346 = vmatprep.mubr.msk.f32.mxu0 %vm75_vm0, %v52_v16 }
  0x22   :  { %2347 = vmatmul.mubr.msk.f32.gmra.mxu0 %vm75_vm0, %v53_v17  ;;  %v2165_v17 = vld [vmem:[%s3069_s3 + $0x88] sm:$0xff] }
  0x23   :  { %2349 = vmatprep.mubr.msk.f32.mxu0 %vm75_vm0, %v54_v18  ;;  %v2164_v18 = vld [vmem:[%s3069_s3 + $0x80] sm:$0xff] }
  0x26   :  { %2350 = vmatmul.mubr.msk.f32.gmra.mxu0 %vm75_vm0, %v55_v19 }
  0x27   :  { %2352 = vmatprep.mubr.msk.f32.mxu0 %vm75_vm0, %v56_v20  ;;  %v2186_v20 = vld [vmem:[%s3069_s3 + $0xf8] sm:$0xff] }
  0x2a   :  { %2353 = vmatmul.mubr.msk.f32.gmra.mxu0 %vm75_vm0, %v57_v21 }
  0x2b   :  { %2355 = vmatprep.mubr.msk.f32.mxu0 %vm75_vm0, %v58_v22 }
  0x2e   :  { %2356 = vmatmul.mubr.msk.f32.gmra.mxu0 %vm75_vm0, %v59_v23  ;;  %v2168_v23 = vld [vmem:[%s3069_s3 + $0x98] sm:$0xff] }
  0x2f   :  { %2439 = vmatprep.mubr.msk.f32.mxu0 %vm2554_vm1, %v2553_v24 }
  0xd2   :  { %v2336_v29 = vpop.f32.mrf.mxu0 }
  0xd3   :  { %v196_v34 = vadd.f32 %v2336_v29, %v2738_v30 }
  0xd4   :  { %v190_v31 = vpop.f32.mrf.mxu0 }
  0xd5   :  { %v191_v32 = vadd.f32 %v2738_v30, %v190_v31  ;;  %v270_v40 = vmax.f32 %v196_v34, 0.0  ;;  %v2171_v31 = vld [vmem:[%s3069_s3 + $0xa8] sm:$0xff] }
  0xd6   :  { %v2339_v33 = vpop.f32.mrf.mxu0 }
  0xd7   :  { %v269_v35 = vmax.f32 %v191_v32, 0.0  ;;  %v206_v46 = vadd.f32 %v2339_v33, %v2738_v30  ;;  %v2170_v33 = vld [vmem:[%s3069_s3 + $0xa0] sm:$0xff] }
  0xd8   :  { %v200_v37 = vpop.f32.mrf.mxu0 }
  0xd9   :  { %2363 = vmatmul.mubr.msk.f32.vlgmr.msra.gmra.mxu1 %vm294_vm2, %v269_v35  ;;  %v201_v41 = vadd.f32 %v2738_v30, %v200_v37  ;;  %v272_v52 = vmax.f32 %v206_v46, 0.0  ;;  %v1533_v46 = vld [vmem:[%s3071_s5 + $0x8] sm:$0xff] }
  0xda   :  { %2366 = vmatpush3.msra.mxu1 %v2144_v36  ;;  %2369 = vmatprep.mubr.msk.f32.mxu1 %vm2554_vm1, %v2553_v24  ;;  %v2342_v39 = vpop.f32.mrf.mxu0  ;;  %v2177_v36 = vld [vmem:[%s3069_s3 + $0xc8] sm:$0xff] }
  0xdb   :  { %2367 = vmatprep.subr.mxu1 %v2553_v24  ;;  %v271_v47 = vmax.f32 %v201_v41, 0.0  ;;  %v216_v58 = vadd.f32 %v2342_v39, %v2738_v30  ;;  %v2183_v41 = vld [vmem:[%s3069_s3 + $0xe8] sm:$0xff] }
  0xdc   :  { %2368 = vmatpush3.msra.mxu1 %v2143_v38  ;;  %v210_v43 = vpop.f32.mrf.mxu0  ;;  %v2176_v38 = vld [vmem:[%s3069_s3 + $0xc0] sm:$0xff] }
  0xdd   :  { %2372 = vmatprep.subr.mxu1 %v2553_v24  ;;  %2370 = vmatmul.mubr.msk.f32.vlgmr.msra.gmra.mxu1 %vm294_vm2, %v270_v40  ;;  %v211_v53 = vadd.f32 %v2738_v30, %v210_v43  ;;  %v274_v3 = vmax.f32 %v216_v58, 0.0  ;;  %v1535_v43 = vld [vmem:[%s3071_s5 + $0x18] sm:$0xff] }
  0xde   :  { %2373 = vmatpush3.msra.mxu1 %v2147_v42  ;;  %2376 = vmatprep.mubr.msk.f32.mxu1 %vm2554_vm1, %v2553_v24  ;;  %v2345_v45 = vpop.f32.mrf.mxu0 }
  0xdf   :  { %2374 = vmatprep.subr.mxu1 %v2553_v24  ;;  %v273_v59 = vmax.f32 %v211_v53, 0.0  ;;  %v226_v9 = vadd.f32 %v2345_v45, %v2738_v30  ;;  %v2193_v45 = vld [vmem:[%s3071_s5 + $0x38] sm:$0xff] }
  0xe0   :  { %2375 = vmatpush3.msra.mxu1 %v2146_v44  ;;  %v220_v49 = vpop.f32.mrf.mxu0  ;;  %v1534_v44 = vld [vmem:[%s3071_s5 + $0x10] sm:$0xff] }
  0xe1   :  { %2379 = vmatprep.subr.mxu1 %v2553_v24  ;;  %2377 = vmatmul.mubr.msk.f32.vlgmr.msra.gmra.mxu1 %vm294_vm2, %v271_v47  ;;  %v221_v4 = vadd.f32 %v2738_v30, %v220_v49  ;;  %v276_v15 = vmax.f32 %v226_v9, 0.0  ;;  %v2192_v47 = vld [vmem:[%s3071_s5 + $0x30] sm:$0xff]  ;;  %v2191_v49 = vld [vmem:[%s3071_s5 + $0x28] sm:$0xff] }
  0xe2   :  { %2380 = vmatpush3.msra.mxu1 %v2150_v48  ;;  %2383 = vmatprep.mubr.msk.f32.mxu1 %vm2554_vm1, %v2553_v24  ;;  %v2775_v51 = vpop.f32.mrf.mxu0  ;;  %v1532_v48 = vld [vmem:[%s3071_s5] sm:$0xff] }
  0xe3   :  { %2381 = vmatprep.subr.mxu1 %v2553_v24  ;;  %v275_v10 = vmax.f32 %v221_v4, 0.0  ;;  %v236_v21 = vadd.f32 %v2775_v51, %v2738_v30 }
  0xe4   :  { %2382 = vmatpush3.msra.mxu1 %v2149_v50  ;;  %v230_v55 = vpop.f32.mrf.mxu0  ;;  %v2190_v50 = vld [vmem:[%s3071_s5 + $0x20] sm:$0xff] }
  0xe5   :  { %2386 = vmatprep.subr.mxu1 %v2553_v24  ;;  %2384 = vmatmul.mubr.msk.f32.vlgmr.msra.gmra.mxu1 %vm294_vm2, %v272_v52  ;;  %v231_v16 = vadd.f32 %v2738_v30, %v230_v55  ;;  %v278_v28 = vmax.f32 %v236_v21, 0.0 }
  0xe6   :  { %2387 = vmatpush3.msra.mxu1 %v2153_v54  ;;  %2390 = vmatprep.mubr.msk.f32.mxu1 %vm2554_vm1, %v2553_v24  ;;  %v2351_v57 = vpop.f32.mrf.mxu0 }
  0xe7   :  { %2388 = vmatprep.subr.mxu1 %v2553_v24  ;;  %v246_v61 = vadd.f32 %v2351_v57, %v2738_v30  ;;  %v277_v22 = vmax.f32 %v231_v16, 0.0 }
  0xe8   :  { %2389 = vmatpush3.msra.mxu1 %v2152_v56  ;;  %v2795_v62 = vpop.f32.mrf.mxu0 }
  0xe9   :  { %2393 = vmatprep.subr.mxu1 %v2553_v24  ;;  %2391 = vmatmul.mubr.msk.f32.vlgmr.msra.gmra.mxu1 %vm294_vm2, %v273_v59  ;;  %v280_v0 = vmax.f32 %v246_v61, 0.0  ;;  %v241_v29 = vadd.f32 %v2738_v30, %v2795_v62 }
  0xea   :  { %2394 = vmatpush3.msra.mxu1 %v2156_v60  ;;  %2397 = vmatprep.mubr.msk.f32.mxu1 %vm2554_vm1, %v2553_v24  ;;  %v2354_v2 = vpop.f32.mrf.mxu0  ;;  %v2141_v60 = vld [vmem:[%s3072_s4] ss:$0 sm:$0xff] }
  0xeb   :  { %2395 = vmatprep.subr.mxu1 %v2553_v24  ;;  %2440 = vmatmul.mubr.msk.f32.vlgmr.msra.gmra.mxu0 %vm294_vm2, %v280_v0  ;;  %v256_v6 = vadd.f32 %v2354_v2, %v2738_v30  ;;  %v279_v34 = vmax.f32 %v241_v29, 0.0 }
  0xec   :  { %2396 = vmatpush3.msra.mxu1 %v2155_v63  ;;  %2450 = vmatpush3.msra.mxu0 %v2180_v1  ;;  %v250_v14 = vpop.f32.mrf.mxu0 }
  0xed   :  { %2400 = vmatprep.subr.mxu1 %v2553_v24  ;;  %2398 = vmatmul.mubr.msk.f32.vlgmr.msra.gmra.mxu1 %vm294_vm2, %v274_v3  ;;  %v282_v12 = vmax.f32 %v256_v6, 0.0  ;;  %v251_v35 = vadd.f32 %v2738_v30, %v250_v14 }
  0xee   :  { %2401 = vmatpush3.msra.mxu1 %v2159_v5  ;;  %2404 = vmatprep.mubr.msk.f32.mxu1 %vm2554_vm1, %v2553_v24  ;;  %v2357_v19 = vpop.f32.mrf.mxu0 }
  0xef   :  { %2402 = vmatprep.subr.mxu1 %v2553_v24  ;;  %2451 = vmatprep.subr.mxu0 %v2553_v24  ;;  %v266_v25 = vadd.f32 %v2357_v19, %v2738_v30  ;;  %v281_v39 = vmax.f32 %v251_v35, 0.0 }
  0xf0   :  { %2403 = vmatpush3.msra.mxu1 %v2158_v7  ;;  %2452 = vmatpush3.msra.mxu0 %v2179_v8  ;;  %v260_v37 = vpop.f32.mrf.mxu0 }
  0xf1   :  { %2407 = vmatprep.subr.mxu1 %v2553_v24  ;;  %2405 = vmatmul.mubr.msk.f32.vlgmr.msra.gmra.mxu1 %vm294_vm2, %v275_v10  ;;  %v284_v32 = vmax.f32 %v266_v25, 0.0  ;;  %v261_v40 = vadd.f32 %v2738_v30, %v260_v37  ;;  %v2182_v30 = vld [vmem:[%s3069_s3 + $0xe0] sm:$0xff] }
  0xf2   :  { %2408 = vmatpush3.msra.mxu1 %v2162_v11  ;;  %2411 = vmatprep.mubr.msk.f32.mxu1 %vm2554_vm1, %v2553_v24 }
  0xf3   :  { %2409 = vmatprep.subr.mxu1 %v2553_v24  ;;  %2453 = vmatprep.mubr.msk.f32.mxu0 %vm2554_vm1, %v2553_v24  ;;  %v283_v42 = vmax.f32 %v261_v40, 0.0 }
  0xf4   :  { %2410 = vmatpush3.msra.mxu1 %v2161_v13  ;;  %2454 = vmatmul.mubr.msk.f32.vlgmr.msra.gmra.mxu0 %vm294_vm2, %v282_v12 }
  0xf5   :  { %2414 = vmatprep.subr.mxu1 %v2553_v24  ;;  %2412 = vmatmul.mubr.msk.f32.vlgmr.msra.gmra.mxu1 %vm294_vm2, %v276_v15 }
  0xf6   :  { %2415 = vmatpush3.msra.mxu1 %v2165_v17  ;;  %2418 = vmatprep.mubr.msk.f32.mxu1 %vm2554_vm1, %v2553_v24 }
  0xf7   :  { %2416 = vmatprep.subr.mxu1 %v2553_v24  ;;  %2463 = vmatprep.subr.mxu0 %v2553_v24 }
  0xf8   :  { %2417 = vmatpush3.msra.mxu1 %v2164_v18  ;;  %2464 = vmatpush3.msra.mxu0 %v2186_v20 }
  0xf9   :  { %2421 = vmatprep.subr.mxu1 %v2553_v24  ;;  %2419 = vmatmul.mubr.msk.f32.vlgmr.msra.gmra.mxu1 %vm294_vm2, %v277_v22 }
  0xfa   :  { %2422 = vmatpush3.msra.mxu1 %v2168_v23  ;;  %2425 = vmatprep.mubr.msk.f32.mxu1 %vm2554_vm1, %v2553_v24 }
  0xfb   :  { %2423 = vmatprep.subr.mxu1 %v2553_v24  ;;  %2465 = vmatprep.subr.mxu0 %v2553_v24 }
  0xfc   :  { %2424 = vmatpush3.msra.mxu1 %v2167_v26  ;;  %2466 = vmatpush3.msra.mxu0 %v2185_v27 }
  0xfd   :  { %2428 = vmatprep.subr.mxu1 %v2553_v24  ;;  %2426 = vmatmul.mubr.msk.f32.vlgmr.msra.gmra.mxu1 %vm294_vm2, %v278_v28 }
  0xfe   :  { %2429 = vmatpush3.msra.mxu1 %v2171_v31  ;;  %2432 = vmatprep.mubr.msk.f32.mxu1 %vm2554_vm1, %v2553_v24 }
  0xff   :  { %2430 = vmatprep.subr.mxu1 %v2553_v24  ;;  %2467 = vmatprep.mubr.msk.f32.mxu0 %vm2554_vm1, %v2553_v24 }
 0x100   :  { %2431 = vmatpush3.msra.mxu1 %v2170_v33  ;;  %2468 = vmatmul.mubr.msk.f32.vlgmr.msra.gmra.mxu0 %vm294_vm2, %v284_v32 }
 0x101   :  { %2442 = vmatprep.subr.mxu1 %v2553_v24  ;;  %2433 = vmatmul.mubr.msk.f32.vlgmr.msra.gmra.mxu1 %vm294_vm2, %v279_v34 }
 0x102   :  { %2443 = vmatpush3.msra.mxu1 %v2177_v36  ;;  %2446 = vmatprep.mubr.msk.f32.mxu1 %vm2554_vm1, %v2553_v24 }
 0x103   :  { %2444 = vmatprep.subr.mxu1 %v2553_v24  ;;  %2481 = vmatprep.subr.mxu0 %v2553_v24 }
 0x104   :  { %2445 = vmatpush3.msra.mxu1 %v2176_v38  ;;  %2489 = vmatprep.mubr.msk.f32.mxu0 %vm2554_vm1, %v2553_v24 }
 0x105   :  { %2456 = vmatprep.subr.mxu1 %v2553_v24  ;;  %2447 = vmatmul.mubr.msk.f32.vlgmr.msra.gmra.mxu1 %vm294_vm2, %v281_v39  ;;  %v2198_v39 = vld [vmem:[%s3071_s5 + $0x58] sm:$0xff] }
 0x106   :  { %2457 = vmatpush3.msra.mxu1 %v2183_v41  ;;  %2460 = vmatprep.mubr.msk.f32.mxu1 %vm2554_vm1, %v2553_v24  ;;  %v2197_v41 = vld [vmem:[%s3071_s5 + $0x50] sm:$0xff] }
 0x107   :  { %2458 = vmatprep.subr.mxu1 %v2553_v24  ;;  %2482 = vmatpush3.msra.mxu0 %v2193_v45  ;;  %v2201_v45 = vld [vmem:[%s3071_s5 + $0x68] sm:$0xff] }
 0x108   :  { %2459 = vmatpush3.msra.mxu1 %v2182_v30  ;;  %2483 = vmatprep.subr.mxu0 %v2553_v24  ;;  %v2203_v30 = vld [vmem:[%s3071_s5 + $0x78] sm:$0xff] }
 0x109   :  { %2461 = vmatmul.mubr.msk.f32.vlgmr.msra.gmra.mxu1 %vm294_vm2, %v283_v42  ;;  %2470 = vmatprep.subr.mxu1 %v2553_v24  ;;  %v2196_v42 = vld [vmem:[%s3071_s5 + $0x48] sm:$0xff] }
 0x10a   :  { %2478 = vmatprep.mubr.msk.f32.mxu1 %vm2554_vm1, %v2553_v24  ;;  %2471 = vmatpush3.msra.mxu1 %v1535_v43  ;;  %v2202_v43 = vld [vmem:[%s3071_s5 + $0x70] sm:$0xff] }
 0x10b   :  { %2472 = vmatprep.subr.mxu1 %v2553_v24  ;;  %2484 = vmatpush3.msra.mxu0 %v2192_v47  ;;  %v2200_v47 = vld [vmem:[%s3071_s5 + $0x60] sm:$0xff] }
 0x10c   :  { %2473 = vmatpush3.msra.mxu1 %v1534_v44  ;;  %2485 = vmatprep.subr.mxu0 %v2553_v24  ;;  %v2195_v44 = vld [vmem:[%s3071_s5 + $0x40] sm:$0xff] }
 0x10d   :  { %2474 = vmatprep.subr.mxu1 %v2553_v24  ;;  %2486 = vmatpush3.msra.mxu0 %v2191_v49  ;;  %v1852_v49 = vld [vmem:[%s3073_s7 + $0x18] sm:$0xff] }
 0x10e   :  { %2475 = vmatpush3.msra.mxu1 %v1533_v46  ;;  %2487 = vmatprep.subr.mxu0 %v2553_v24 }
 0x10f   :  { %2476 = vmatprep.subr.mxu1 %v2553_v24  ;;  %2488 = vmatpush3.msra.mxu0 %v2190_v50  ;;  %v1851_v50 = vld [vmem:[%s3073_s7 + $0x10] sm:$0xff] }
 0x110   :  { %2477 = vmatpush3.msra.mxu1 %v1532_v48  ;;  %2503 = vmatprep.subr.mxu0 %v2553_v24 }
 0x111   :  { %2492 = vmatprep.subr.mxu1 %v2553_v24 }
 0x199   :  { %v364_v51 = vpop.f32.mrf.mxu1 }
 0x19a   :  { %v368_v1 = vadd.f32 %v2141_v60, %v364_v51  ;;  %v1850_v51 = vld [vmem:[%s3073_s7 + $0x8] sm:$0xff] }
 0x19b   :  { %v2364_v52 = vpop.f32.mrf.mxu1 }
 0x19c   :  { %v1849_v52 = vld [vmem:[%s3073_s7] sm:$0xff] }
 0x19d   :  { %v441_v53 = vpop.f32.mrf.mxu1 }
 0x19e   :  { %v445_v3 = vadd.f32 %v441_v53, %v368_v1  ;;  %v1937_v53 = vld [vmem:[%s3074_s9 + $0x18] sm:$0xff] }
 0x19f   :  { %v2371_v54 = vpop.f32.mrf.mxu1 }
 0x1a0   :  { %v2188_v54 = vld [vmem:[%s3075_s6] ss:$0 sm:$0xff] }
 0x1a1   :  { %v518_v55 = vpop.f32.mrf.mxu1 }
 0x1a2   :  { %v522_v5 = vadd.f32 %v518_v55, %v445_v3 }
 0x1a3   :  { %v2378_v56 = vpop.f32.mrf.mxu1 }
 0x1a5   :  { %v595_v57 = vpop.f32.mrf.mxu1 }
 0x1a6   :  { %v599_v7 = vadd.f32 %v595_v57, %v522_v5  ;;  %v1935_v5 = vld [vmem:[%s3074_s9 + $0x8] sm:$0xff] }
 0x1a7   :  { %v2385_v58 = vpop.f32.mrf.mxu1 }
 0x1a9   :  { %v672_v59 = vpop.f32.mrf.mxu1 }
 0x1aa   :  { %v676_v10 = vadd.f32 %v672_v59, %v599_v7  ;;  %v2022_v7 = vld [vmem:[%s3076_s11 + $0x18] sm:$0xff] }
 0x1ab   :  { %v2392_v61 = vpop.f32.mrf.mxu1  ;;  %v1211_v62 = vpop.f32.mrf.mxu0 }
 0x1ad   :  { %v749_v63 = vpop.f32.mrf.mxu1  ;;  %v2441_v0 = vpop.f32.mrf.mxu0 }
 0x1ae   :  { %v753_v13 = vadd.f32 %v749_v63, %v676_v10 }
 0x1af   :  { %v2399_v2 = vpop.f32.mrf.mxu1 }
 0x1b1   :  { %v826_v4 = vpop.f32.mrf.mxu1 }
 0x1b2   :  { %v830_v15 = vadd.f32 %v826_v4, %v753_v13  ;;  %v1936_v4 = vld [vmem:[%s3074_s9 + $0x10] sm:$0xff] }
 0x1b3   :  { %v2406_v6 = vpop.f32.mrf.mxu1  ;;  %v2021_v13 = vld [vmem:[%s3076_s11 + $0x10] sm:$0xff] }
 0x1b4   :  { %v1365_v8 = vpop.f32.mrf.mxu0  ;;  %v1934_v6 = vld [vmem:[%s3074_s9] sm:$0xff] }
 0x1b5   :  { %v903_v9 = vpop.f32.mrf.mxu1 }
 0x1b6   :  { %v2455_v11 = vpop.f32.mrf.mxu0  ;;  %v907_v17 = vadd.f32 %v903_v9, %v830_v15  ;;  %v2019_v15 = vld [vmem:[%s3076_s11] sm:$0xff] }
 0x1b7   :  { %v2413_v12 = vpop.f32.mrf.mxu1 }
 0x1b9   :  { %v980_v14 = vpop.f32.mrf.mxu1 }
 0x1ba   :  { %v984_v19 = vadd.f32 %v980_v14, %v907_v17  ;;  %v2020_v14 = vld [vmem:[%s3076_s11 + $0x8] sm:$0xff] }
 0x1bb   :  { %v2420_v16 = vpop.f32.mrf.mxu1 }
 0x1bc   :  { %v2207_v16 = vld [vmem:[%s3078_s10] ss:$0 sm:$0xff] }
 0x1bd   :  { %v1057_v18 = vpop.f32.mrf.mxu1 }
 0x1be   :  { %v1061_v21 = vadd.f32 %v1057_v18, %v984_v19 }
 0x1bf   :  { %v2427_v20 = vpop.f32.mrf.mxu1 }
 0x1c0   :  { %v1519_v22 = vpop.f32.mrf.mxu0 }
 0x1c1   :  { %v1134_v23 = vpop.f32.mrf.mxu1 }
 0x1c2   :  { %v1138_v25 = vadd.f32 %v1134_v23, %v1061_v21  ;;  %v2469_v26 = vpop.f32.mrf.mxu0  ;;  %v2209_v21 = vld [vmem:[%s3079_s12] ss:$0 sm:$0xff] }
 0x1c3   :  { %v2434_v27 = vpop.f32.mrf.mxu1 }
 0x1c4   :  { %v1215_v28 = vadd.f32 %v1211_v62, %v1138_v25 }
 0x1c5   :  { %v1288_v29 = vpop.f32.mrf.mxu1 }
 0x1c6   :  { %v1292_v31 = vadd.f32 %v1288_v29, %v1215_v28 }
 0x1c7   :  { %v2448_v32 = vpop.f32.mrf.mxu1 }
 0x1c8   :  { %v1369_v33 = vadd.f32 %v1365_v8, %v1292_v31  ;;  %v2205_v8 = vld [vmem:[%s3077_s8] ss:$0 sm:$0xff] }
 0x1c9   :  { %v1442_v34 = vpop.f32.mrf.mxu1 }
 0x1ca   :  { %v1446_v35 = vadd.f32 %v1442_v34, %v1369_v33 }
 0x1cb   :  { %v2462_v36 = vpop.f32.mrf.mxu1 }
 0x1cc   :  { %v1523_v37 = vadd.f32 %v1519_v22, %v1446_v35 }
 0x1ce   :  { %v1524_v38 = vmax.f32 %v1523_v37, 0.0 }
 0x1d0   :  { %v1616_v40 = vrot.slane %v1524_v38, 2  ;;  %2479 = vmatmul.mubr.msk.f32.vlgmr.msra.gmra.mxu1 %vm1536_vm3, %v1524_v38  ;;  %v1695_v46 = vrot.slane %v1524_v38, 4  ;;  %v1774_v48 = vrot.slane %v1524_v38, 6 }
 0x1d1   :  { %2493 = vmatpush3.msra.mxu1 %v2198_v39  ;;  %2500 = vmatprep.mubr.msk.f32.mxu1 %vm2554_vm1, %v2553_v24 }
 0x1d2   :  { %2494 = vmatprep.subr.mxu1 %v2553_v24  ;;  %2490 = vmatmul.mubr.msk.f32.vlgmr.msra.gmra.mxu0 %vm1536_vm3, %v1616_v40 }
 0x1d3   :  { %2495 = vmatpush3.msra.mxu1 %v2197_v41  ;;  %2504 = vmatpush3.msra.mxu0 %v2203_v30 }
 0x1d4   :  { %2496 = vmatprep.subr.mxu1 %v2553_v24  ;;  %2505 = vmatprep.subr.mxu0 %v2553_v24 }
 0x1d5   :  { %2497 = vmatpush3.msra.mxu1 %v2196_v42  ;;  %2506 = vmatpush3.msra.mxu0 %v2202_v43 }
 0x1d6   :  { %2498 = vmatprep.subr.mxu1 %v2553_v24  ;;  %2507 = vmatprep.subr.mxu0 %v2553_v24 }
 0x1d7   :  { %2499 = vmatpush3.msra.mxu1 %v2195_v44  ;;  %2508 = vmatpush3.msra.mxu0 %v2201_v45 }
 0x1d8   :  { %2501 = vmatmul.mubr.msk.f32.vlgmr.msra.gmra.mxu1 %vm1536_vm3, %v1695_v46  ;;  %2509 = vmatprep.subr.mxu0 %v2553_v24 }
 0x1d9   :  { %2510 = vmatpush3.msra.mxu0 %v2200_v47  ;;  %2511 = vmatprep.mubr.msk.f32.mxu0 %vm2554_vm1, %v2553_v24 }
 0x1da   :  { %2512 = vmatmul.mubr.msk.f32.vlgmr.msra.gmra.mxu0 %vm1536_vm3, %v1774_v48  ;;  %2514 = vmatprep.subr.mxu1 %v2553_v24 }
 0x1db   :  { %2522 = vmatprep.mubr.msk.f32.mxu1 %vm2554_vm1, %v2553_v24  ;;  %2525 = vmatprep.subr.mxu0 %v2553_v24 }
 0x1dc   :  { %2533 = vmatprep.mubr.msk.f32.mxu0 %vm2554_vm1, %v2553_v24  ;;  %2515 = vmatpush3.msra.mxu1 %v1852_v49 }
 0x1dd   :  { %2516 = vmatprep.subr.mxu1 %v2553_v24  ;;  %2526 = vmatpush3.msra.mxu0 %v1937_v53 }
 0x1de   :  { %2517 = vmatpush3.msra.mxu1 %v1851_v50  ;;  %2527 = vmatprep.subr.mxu0 %v2553_v24 }
 0x1df   :  { %2518 = vmatprep.subr.mxu1 %v2553_v24  ;;  %2528 = vmatpush3.msra.mxu0 %v1936_v4 }
 0x1e0   :  { %2519 = vmatpush3.msra.mxu1 %v1850_v51  ;;  %2529 = vmatprep.subr.mxu0 %v2553_v24 }
 0x1e1   :  { %2520 = vmatprep.subr.mxu1 %v2553_v24  ;;  %2530 = vmatpush3.msra.mxu0 %v1935_v5 }
 0x1e2   :  { %2521 = vmatpush3.msra.mxu1 %v1849_v52  ;;  %2531 = vmatprep.subr.mxu0 %v2553_v24 }
 0x1e3   :  { %2536 = vmatprep.subr.mxu1 %v2553_v24  ;;  %2532 = vmatpush3.msra.mxu0 %v1934_v6 }
 0x290   :  { %v1606_v55 = vpop.f32.mrf.mxu1 }
 0x291   :  { %v1610_v58 = vadd.f32 %v2188_v54, %v1606_v55 }
 0x292   :  { %v2480_v56 = vpop.f32.mrf.mxu1  ;;  %v1685_v57 = vpop.f32.mrf.mxu0 }
 0x293   :  { %v1689_v60 = vadd.f32 %v1685_v57, %v1610_v58 }
 0x294   :  { %v2491_v59 = vpop.f32.mrf.mxu0 }
 0x298   :  { %v1764_v61 = vpop.f32.mrf.mxu1 }
 0x299   :  { %v1768_v62 = vadd.f32 %v1764_v61, %v1689_v60 }
 0x29a   :  { %v2502_v63 = vpop.f32.mrf.mxu1  ;;  %v1843_v0 = vpop.f32.mrf.mxu0 }
 0x29b   :  { %v1847_v1 = vadd.f32 %v1843_v0, %v1768_v62 }
 0x29c   :  { %v2513_v2 = vpop.f32.mrf.mxu0 }
 0x29d   :  { %v1848_v3 = vmax.f32 %v1847_v1, 0.0 }
 0x29f   :  { %2523 = vmatmul.mubr.msk.f32.vlgmr.msra.gmra.mxu1 %vm1536_vm3, %v1848_v3 }
 0x2a0   :  { %2544 = vmatprep.mubr.msk.f32.mxu1 %vm2554_vm1, %v2553_v24  ;;  %2537 = vmatpush3.msra.mxu1 %v2022_v7 }
 0x2a1   :  { %2538 = vmatprep.subr.mxu1 %v2553_v24 }
 0x2a2   :  { %2539 = vmatpush3.msra.mxu1 %v2021_v13 }
 0x2a3   :  { %2540 = vmatprep.subr.mxu1 %v2553_v24 }
 0x2a4   :  { %2541 = vmatpush3.msra.mxu1 %v2020_v14 }
 0x2a5   :  { %2542 = vmatprep.subr.mxu1 %v2553_v24 }
 0x2a6   :  { %2543 = vmatpush3.msra.mxu1 %v2019_v15 }
 0x35f   :  { %v1929_v9 = vpop.f32.mrf.mxu1 }
 0x360   :  { %v1930_v10 = vadd.f32 %v2205_v8, %v1929_v9 }
 0x361   :  { %v2524_v11 = vpop.f32.mrf.mxu1 }
 0x362   :  { %v1933_v12 = vmax.f32 %v1930_v10, 0.0 }
 0x364   :  { %2534 = vmatmul.mubr.msk.f32.vlgmr.msra.gmra.mxu0 %vm1536_vm3, %v1933_v12 }
 0x424   :  { %v2014_v17 = vpop.f32.mrf.mxu0 }
 0x425   :  { %v2015_v18 = vadd.f32 %v2207_v16, %v2014_v17 }
 0x426   :  { %v2535_v19 = vpop.f32.mrf.mxu0 }
 0x427   :  { %v2018_v20 = vmax.f32 %v2015_v18, 0.0 }
 0x429   :  { %2545 = vmatmul.mubr.msk.f32.vlgmr.msra.gmra.mxu1 %vm1536_vm3, %v2018_v20 }
 0x4e9   :  { %v2099_v24 = vpop.f32.mrf.mxu1 }
 0x4ea   :  { %v2100_v22 = vadd.f32 %v2209_v21, %v2099_v24 }
 0x4eb   :  { %v2546_v23 = vpop.f32.mrf.mxu1 }
 0x4ec   :  { %v2104_v25 = vand.u32 2147483647, %v2100_v22  ;;  %v2103_v37 = vmax.f32 %v2100_v22, 0.0 }
 0x4ee   :  { %v2105_v26 = vsub.f32 0.0, %v2104_v25 }
 0x4f0   :  { %v2106_v27 = vmul.f32 1.442695, %v2105_v26 }
 0x4f2   :  { %2549 = vpow2.f32 %v2106_v27 }
 0x4ff   :  { %v2550_v28 = vpop.eup %2549 }
 0x500   :  { %v2108_v29 = vadd.f32 1.0, %v2550_v28  ;;  %v2111_v31 = vmul.f32 -0.5, %v2550_v28  ;;  %v2114_v33 = vand.u32 2147483647, %v2550_v28 }
 0x502   :  { %2551 = vlog2.f32 %v2108_v29  ;;  %v2112_v32 = vadd.f32 1.0, %v2111_v31  ;;  %vm2115_vm4 = vcmp.lt.f32.partialorder %v2114_v33, 0.0004427343 }
 0x504   :  { %v2113_v36 = vmul.f32 %v2550_v28, %v2112_v32 }
 0x50f   :  { %v2552_v34 = vpop.eup %2551 }
 0x510   :  { %v2110_v35 = vmul.f32 0.6931472, %v2552_v34 }
 0x512   :  { %v2116_v38 = vsel %vm2115_vm4, %v2113_v36, %v2110_v35 }
 0x513   :  { %v2117_v39 = vadd.f32 %v2116_v38, %v2103_v37 }
 0x515   :  { %v2118_v40 = vadd.f32 1.0, %v2117_v39 }
 0x517   :  { %2119 = vst [vmem:[%s3080_s13] sm:$0x3] %v2118_v40 }

</bundles_post_ra>
